<compile_context>
chip_gen: v6e
topology: v6e:2x2x1
jax: 0.10.0
libtpu: 0.0.40
codegen_flags: <defaults>
</compile_context>

<pallas_src>
import functools
import math

import jax
import jax.numpy as jnp
from jax.experimental import pallas as pl
from jax.experimental.pallas import tpu as pltpu


# ----------------------------- kernels --------------------------------------

def _pe_add_kernel(x_ref, pe_ref, o_ref):
    # (1, lane) pe row broadcasts over the (tr, lane) x tile; jnp promotion
    # reproduces torch's bf16 + f32 -> f32 behaviour.
    o_ref[...] = (x_ref[...] + pe_ref[...]).astype(o_ref.dtype)


def _pe_add_dropout_kernel(seed_ref, x_ref, pe_ref, o_ref, *, p):
    y = x_ref[...] + pe_ref[...]
    # Per-tile seed so different grid steps draw independent dropout masks.
    pltpu.prng_seed(seed_ref[0] + pl.program_id(0))
    bits = pltpu.bitcast(pltpu.prng_random_bits(y.shape), jnp.uint32)
    # keep  <=>  uniform >= p  <=>  bits >= round(p * 2^32)   (one VPU compare)
    threshold = jnp.uint32(min(int(round(p * (1 << 32))), (1 << 32) - 1))
    keep = bits >= threshold
    scale = jnp.asarray(1.0 / (1.0 - p), dtype=y.dtype)
    y = jnp.where(keep, y * scale, jnp.zeros((), dtype=y.dtype))
    o_ref[...] = y.astype(o_ref.dtype)


# ----------------------------- helpers ---------------------------------------

def make_pe_table(d_model, max_len=1):
    """Deterministic construction of the 'pe' buffer, identical to the torch code."""
    position = jnp.arange(max_len, dtype=jnp.float32)[:, None]            # (max_len, 1)
    div_term = jnp.exp(
        jnp.arange(0, d_model, 2, dtype=jnp.float32) * (-math.log(10000.0) / d_model)
    )
    pe = jnp.zeros((max_len, d_model), dtype=jnp.float32)
    pe = pe.at[:, 0::2].set(jnp.sin(position * div_term))
    pe = pe.at[:, 1::2].set(jnp.cos(position * div_term))
    return pe


def _sublane_multiple(dtype):
    # full-vreg sublane packing: 8 for 4-byte, 16 for 2-byte, 32 for 1-byte dtypes
    return max(8, 32 // jnp.dtype(dtype).itemsize)


def _vmem_budget():
    """(per-buffer tile bytes, scoped vmem limit) sized from the chip's VMEM."""
    try:
        cap = pltpu.get_tpu_info().vmem_capacity_bytes     # 128 MiB v5e/v6e, 64 MiB v7x
    except Exception:
        cap = 64 << 20                                     # conservative fallback
    per_buf = min(8 << 20, max(2 << 20, cap // 12))        # ~5-8 MiB per buffer
    limit = min(48 << 20, (cap * 3) // 4)                  # 4 double-buffered tiles fit
    return per_buf, limit


# ----------------------------- forward ---------------------------------------

def positional_encoding_forward(x, pe, *, p=0.1, training=False, seed=0):
    """x: (B, S, D); pe: (1, D) float32 buffer (max_len == 1 as in the module)."""
    B, S, D = x.shape
    assert pe.shape == (1, D), "module uses max_len=1 -> pe must be (1, D)"
    assert 0.0 <= p < 1.0

    out_dtype = jnp.result_type(x.dtype, pe.dtype)         # torch promotion semantics
    total = B * S * D

    # ---- pick a lane-dense flat layout --------------------------------------
    if D % 128 == 0:
        lane, reps = D, 1
    elif 128 % D == 0 and total % 128 == 0:
        lane, reps = 128, 128 // D                          # fuse positions along lanes
    else:
        l = math.lcm(D, 128)
        if l <= 1024 and total % l == 0:
            lane, reps = l, l // D                          # keep stores lane-dense
        else:
            lane, reps = D, 1                               # masked-store fallback
    pe_lane = jnp.tile(pe, (1, reps)) if reps > 1 else pe   # (1, lane), stays float32

    rows = total // lane
    x_flat = x.reshape(rows, lane)

    # ---- tile rows from a byte budget; no padding, partial last block is masked
    per_buf_bytes, vmem_limit = _vmem_budget()
    itemsize = max(jnp.dtype(x.dtype).itemsize, jnp.dtype(out_dtype).itemsize)
    sub = max(_sublane_multiple(x.dtype), _sublane_multiple(out_dtype))
    if rows <= sub:
        tr = rows                                           # full-extent block (legal)
    else:
        tr = max(sub, (per_buf_bytes // (lane * itemsize)) // sub * sub)
        # v7x has 2 TensorCores: keep >= 2 grid steps whenever rows can be split.
        tr = min(tr, max(sub, (rows // 2) // sub * sub))
    grid = (pl.cdiv(rows, tr),)

    bytes_accessed = (rows * lane * jnp.dtype(x.dtype).itemsize
                      + rows * lane * jnp.dtype(out_dtype).itemsize
                      + lane * jnp.dtype(pe.dtype).itemsize)
    cost = pl.CostEstimate(flops=total, transcendentals=0, bytes_accessed=bytes_accessed)
    cparams = pltpu.CompilerParams(
        dimension_semantics=("parallel",),
        vmem_limit_bytes=int(vmem_limit),
    )

    x_spec = pl.BlockSpec((tr, lane), lambda i: (i, 0))
    pe_spec = pl.BlockSpec((1, lane), lambda i: (0, 0))     # resident across the grid
    out_spec = pl.BlockSpec((tr, lane), lambda i: (i, 0))
    out_shape = jax.ShapeDtypeStruct((rows, lane), out_dtype)

    if training and p > 0.0:
        kernel = functools.partial(_pe_add_dropout_kernel, p=float(p))
        seed_arr = jnp.array([seed], dtype=jnp.int32)
        out_flat = pl.pallas_call(
            kernel,
            out_shape=out_shape,
            grid=grid,
            in_specs=[
                pl.BlockSpec(memory_space=pltpu.MemorySpace.SMEM),   # seed scalar
                x_spec,
                pe_spec,
            ],
            out_specs=out_spec,
            compiler_params=cparams,
            cost_estimate=cost,
        )(seed_arr, x_flat, pe_lane)
    else:
        out_flat = pl.pallas_call(
            _pe_add_kernel,
            out_shape=out_shape,
            grid=grid,
            in_specs=[x_spec, pe_spec],
            out_specs=out_spec,
            compiler_params=cparams,
            cost_estimate=cost,
        )(x_flat, pe_lane)

    return out_flat.reshape(B, S, D)


# ----------------------------- demo / self-test ------------------------------

if __name__ == "__main__":
    # shapes consistent with the module's forward: (batch, seq, d_model)
    B, S, D = 2, 8, 32
    dropout_p = 0.1

    key = jax.random.PRNGKey(0)
    x = jax.random.normal(key, (B, S, D), dtype=jnp.float32)
    pe = make_pe_table(D, max_len=1)                        # (1, D) float32
    ref_fn = lambda a: a + pe[None, 0:1, :]                 # x + pe[:x.size(1)], max_len=1

    # --- eval mode (dropout identity, == module.eval()), tiny shape ---
    out = jax.block_until_ready(
        positional_encoding_forward(x, pe, p=dropout_p, training=False))
    assert out.shape == x.shape
    assert jnp.allclose(out, ref_fn(x), atol=1e-6, rtol=1e-6)

    # --- eval mode, larger shape: lane fusion + multi-step grid + partial last block ---
    B2, S2, D2 = 10, 260, 32
    x2 = jax.random.normal(jax.random.PRNGKey(1), (B2, S2, D2), dtype=jnp.float32)
    out2 = jax.block_until_ready(
        positional_encoding_forward(x2, pe, p=dropout_p, training=False))
    assert jnp.allclose(out2, ref_fn(x2), atol=1e-6, rtol=1e-6)

    # --- training-mode smoke test (uses the on-chip TPU PRNG; skipped off-TPU) ---
    if jax.devices()[0].platform == "tpu":
        out3 = jax.block_until_ready(
            positional_encoding_forward(x2, pe, p=dropout_p, training=True, seed=1234))
        assert out3.shape == x2.shape
        scaled_ref = ref_fn(x2) / (1.0 - dropout_p)
        kept = out3 != 0.0
        # kept elements are scaled by 1/(1-p); dropped elements are exactly zero
        assert jnp.allclose(jnp.where(kept, out3, scaled_ref), scaled_ref,
                            atol=1e-5, rtol=1e-5)
        drop_frac = float(1.0 - kept.mean())
        assert 0.0 < drop_frac < 0.35                       # loose sanity for p=0.1

    print("KERNEL_OK")
</pallas_src>

<mosaic_0001>
module attributes {stable_mosaic.version = 11 : i64} {
  func.func @_pe_add_kernel(%arg0: i32, %arg1: memref<4x128xf32, #tpu.memory_space<vmem>>, %arg2: memref<1x128xf32, #tpu.memory_space<vmem>>, %arg3: memref<4x128xf32, #tpu.memory_space<vmem>>) attributes {dimension_semantics = [#tpu.dimension_semantics<parallel>], iteration_bounds = array<i64: 1>, scalar_prefetch = 0 : i64, scratch_operands = 0 : i64, tpu.core_type = #tpu.core_type<tc>, window_params = [{transform_indices = @transform_0, window_bounds = array<i64: 4, 128>}, {pipeline_mode = #tpu.pipeline_mode<synchronous>, transform_indices = @transform_1, window_bounds = array<i64: 1, 128>}, {transform_indices = @transform_2, window_bounds = array<i64: 4, 128>}]} {
    %c0 = arith.constant 0 : index
    %c0_0 = arith.constant 0 : index
    %0 = vector.load %arg1[%c0, %c0_0] : memref<4x128xf32, #tpu.memory_space<vmem>>, vector<4x128xf32>
    %c0_1 = arith.constant 0 : index
    %c0_2 = arith.constant 0 : index
    %1 = vector.load %arg2[%c0_1, %c0_2] : memref<1x128xf32, #tpu.memory_space<vmem>>, vector<1x128xf32>
    %2 = vector.broadcast %1 : vector<1x128xf32> to vector<4x128xf32>
    %3 = arith.addf %0, %2 : vector<4x128xf32>
    %c0_3 = arith.constant 0 : index
    %c0_4 = arith.constant 0 : index
    %4 = vector.load %arg3[%c0_3, %c0_4] : memref<4x128xf32, #tpu.memory_space<vmem>>, vector<4x128xf32>
    tpu.vector_store %arg3[%c0_3, %c0_4], %3 {strides = array<i32>} : memref<4x128xf32, #tpu.memory_space<vmem>>, vector<4x128xf32>,
    return
  }
  func.func @transform_0(%arg0: i32) -> (i32, i32) {
    %c0_i32 = arith.constant 0 : i32
    %c0_i32_0 = arith.constant 0 : i32
    return %arg0, %c0_i32 : i32, i32
  }
  func.func @transform_1(%arg0: i32) -> (i32, i32) {
    %c0_i32 = arith.constant 0 : i32
    %c0_i32_0 = arith.constant 0 : i32
    %c0_i32_1 = arith.constant 0 : i32
    return %c0_i32, %c0_i32_0 : i32, i32
  }
  func.func @transform_2(%arg0: i32) -> (i32, i32) {
    %c0_i32 = arith.constant 0 : i32
    %c0_i32_0 = arith.constant 0 : i32
    return %arg0, %c0_i32 : i32, i32
  }
}

</mosaic_0001>

<bundles_post_ra>
// kernel: tpu_custom_call.1
= control target key start
LH: loop header
LB: loop body
LE: loop exit
PB: predicated region body
PF: predicated region fallthrough
CT: control target
= control target key end

     0   :  { %7 = vsyncpa [#allocation3], 0  ;;  %s122_s0 = inlined_call_operand.hbm [shape: f32[4,128], index: 0, kind: input, shape index: {}]   ;;  %s123_s1 = inlined_call_operand.vmem [shape: f32[1,128], index: 1, kind: input, shape index: {}]   ;;  %s124_s2 = inlined_call_operand.hbm [shape: f32[4,128], index: 2, kind: output, shape index: {}]  }
   0x1   :  { %8 = vsyncpa [#allocation4], 0  ;;  %s96_s9 = smov [#allocation2]  }
   0x2   :  { %s15_s10 = sshll.u32 %s96_s9, 4  ;;  %s16_s10 = int_to_ptr.vmem [resolvable:$true] %s15_s10 }
   0x3   :  { %s60_s11 = scalar_lea.vmem %s16_s10, 64  ;;  %p65_p1 = scmp.lt.s32.totalorder %s16_s10, %s16_s10 }
   0x4   :  { %p61_p0 = scmp.ne.s32.totalorder %s16_s10, %s60_s11  ;;  %p66_p2 = scmp.lt.s32.totalorder %s60_s11, %s60_s11 }
   0x6   :  { %p67_p3 = por %p66_p2, %p65_p1 }
   0x8   :  { %p68_p4 = pnand %p67_p3, %p61_p0 }
   0xa   :  { %71 = shalt.err (!%p68_p4)
}
   0xb   :  { %18 = dma.hbm_to_vmem [thread:$0]  %s122_s0, 64, %s16_s10, [#allocation3]  }
   0xc   :  { %92 = dma.done.wait [#allocation3], 64  }
   0xd   :  { %93 = vsyncadd [#allocation3], 4294967232  ;;  %s97_s14 = smov [#allocation5]   ;;  %v24_v0 = vld [vmem:[#allocation2] sm:$0xf] }
   0xe   :  { %s40_s15 = sshll.u32 %s97_s14, 4  ;;  %v49_v1 = vld [vmem:[%s123_s1] ss:$0 sm:$0xff]  ;;  %s41_s15 = int_to_ptr.vmem [resolvable:$true] %s40_s15 }
   0xf   :  { %v32_v2 = vadd.f32 %v49_v1, %v24_v0  ;;  %s72_s18 = scalar_lea.vmem %s41_s15, 64  ;;  %p77_p6 = scmp.lt.s32.totalorder %s41_s15, %s41_s15 }
  0x10   :  { %p73_p5 = scmp.ne.s32.totalorder %s41_s15, %s72_s18  ;;  %p78_p7 = scmp.lt.s32.totalorder %s72_s18, %s72_s18 }
  0x11   :  { %33 = vst [vmem:[#allocation5] sm:$0xf] %v32_v2 }
  0x12   :  { %p79_p8 = por %p78_p7, %p77_p6 }
  0x14   :  { %p80_p9 = pnand %p79_p8, %p73_p5 }
  0x16   :  { %83 = shalt.err (!%p80_p9)
}
  0x17   :  { %43 = dma.vmem_to_hbm [thread:$0]  %s41_s15, 64, %s124_s2, [#allocation4]  }
  0x18   :  { %94 = dma.done.wait [#allocation4], 64  }
  0x19   :  { %95 = vsyncadd [#allocation4], 4294967232 }
  0x1a   :  { %47 = vsyncpa [#allocation3], 1 }
  0x1b   :  { %48 = vsyncpa [#allocation4], 1 }

</bundles_post_ra>
